<compile_context>
chip_gen: v7x
topology: tpu7x:2x2x1
jax: 0.10.0
libtpu: 0.0.40
codegen_flags: <defaults>
</compile_context>

<pallas_src>
import jax
import jax.numpy as jnp
from jax.experimental import pallas as pl
from jax.experimental.pallas import tpu as pltpu


def _round_up(x, m):
    return ((x + m - 1) // m) * m


# ---------------------------------------------------------------------------
# Kernels
# ---------------------------------------------------------------------------
def _glu_parametric_kernel(x_ref, w_ref, b_ref, o_ref):
    # x_ref: (C_in, TS)   w_ref: (2*C_out_p, C_in)   b_ref: (2*C_out_p, 1) f32
    # o_ref: (C_out, TS)  (C_out <= C_out_p; the value/gate split is at the
    #                      padded, sublane-aligned boundary C_out_p)
    acc = jnp.dot(w_ref[...], x_ref[...], preferred_element_type=jnp.float32)
    acc = acc + b_ref[...]                      # lane-broadcast bias, f32
    c_pad = w_ref.shape[0] // 2                 # C_out_p (multiple of 8)
    c_out = o_ref.shape[0]
    a = acc[:c_pad, :]                          # conv_in half
    g = acc[c_pad:, :]                          # conv_ex half (gate)
    res = a * jax.nn.sigmoid(g)                 # (C_out_p, TS) f32
    o_ref[...] = res[:c_out, :].astype(o_ref.dtype)


def _silu_kernel(x_ref, o_ref):
    # cat([x, x], -1) followed by GLU over the last dim == x * sigmoid(x)
    x = x_ref[...].astype(jnp.float32)
    o_ref[...] = (x * jax.nn.sigmoid(x)).astype(o_ref.dtype)


# ---------------------------------------------------------------------------
# Wrappers
# ---------------------------------------------------------------------------
def glu_parametric(x_nchw, w_in, b_in, w_ex, b_ex, *, spatial_tile=4096):
    """x_nchw: (N, C_in, H, W); w_*: (C_out, C_in, 1, 1) torch layout; b_*: (C_out,)."""
    n, c_in, h, w = x_nchw.shape
    c_out = w_in.shape[0]
    s = h * w
    dtype = x_nchw.dtype
    itemsize = jnp.dtype(dtype).itemsize

    # Pad C_out to a multiple of 8 so the in-kernel value/gate split lands on a
    # vreg sublane boundary.  Only the tiny weight/bias tensors are padded.
    c_out_p = _round_up(c_out, 8)
    w_in_m = w_in.reshape(c_out, c_in).astype(dtype)
    w_ex_m = w_ex.reshape(c_out, c_in).astype(dtype)
    b_in_v = b_in.astype(jnp.float32)
    b_ex_v = b_ex.astype(jnp.float32)
    if c_out_p != c_out:
        pad = c_out_p - c_out
        w_in_m = jnp.pad(w_in_m, ((0, pad), (0, 0)))
        w_ex_m = jnp.pad(w_ex_m, ((0, pad), (0, 0)))
        b_in_v = jnp.pad(b_in_v, (0, pad))
        b_ex_v = jnp.pad(b_ex_v, (0, pad))
    w_cat = jnp.concatenate([w_in_m, w_ex_m], axis=0)           # (2*C_out_p, C_in)
    b_cat = jnp.concatenate([b_in_v, b_ex_v]).reshape(2 * c_out_p, 1)

    # 1x1 conv on NCHW == per-image matmul over the flattened spatial dim.
    x3 = x_nchw.reshape(n, c_in, s)

    # Spatial tile: multiple of 128 (lane dim), sized to keep the double-
    # buffered working set small; full extent when the image is small.
    bytes_per_col = c_in * itemsize + 2 * c_out_p * 4 + c_out_p * itemsize
    ts_cap = max(128, min(spatial_tile, (6 * 1024 * 1024) // max(bytes_per_col, 1)))
    ts_cap = (ts_cap // 128) * 128
    ts = s if s <= ts_cap else ts_cap

    grid = (n, pl.cdiv(s, ts))

    cost = pl.CostEstimate(
        flops=2 * n * s * c_in * (2 * c_out_p),
        transcendentals=n * s * c_out_p,
        bytes_accessed=int((x3.size + w_cat.size) * itemsize
                           + b_cat.size * 4
                           + n * c_out * s * itemsize),
    )

    out3 = pl.pallas_call(
        _glu_parametric_kernel,
        out_shape=jax.ShapeDtypeStruct((n, c_out, s), dtype),
        grid=grid,
        in_specs=[
            pl.BlockSpec((None, c_in, ts), lambda i, j: (i, 0, j)),     # x tile
            pl.BlockSpec((2 * c_out_p, c_in), lambda i, j: (0, 0)),     # fused W
            pl.BlockSpec((2 * c_out_p, 1), lambda i, j: (0, 0)),        # fused b
        ],
        out_specs=pl.BlockSpec((None, c_out, ts), lambda i, j: (i, 0, j)),
        compiler_params=pltpu.CompilerParams(
            dimension_semantics=("parallel", "parallel"),
            vmem_limit_bytes=32 * 1024 * 1024,
        ),
        cost_estimate=cost,
    )(x3, w_cat, b_cat)

    return out3.reshape(n, c_out, h, w)


def glu_nonparametric(x_nchw):
    n, c, h, w = x_nchw.shape
    rows, cols = n * c, h * w
    x2d = x_nchw.reshape(rows, cols)            # lane-dense when H*W % 128 == 0
    itemsize = jnp.dtype(x_nchw.dtype).itemsize

    # Tile columns only for very large spatial extents; otherwise full width.
    col_tile = cols if cols <= 16384 else 16384     # 16384 is a multiple of 128
    target_rows = max(8, (4 * 1024 * 1024) // max(col_tile * itemsize, 1))
    tr = rows if rows <= target_rows else max(8, (target_rows // 8) * 8)

    grid = (pl.cdiv(rows, tr), pl.cdiv(cols, col_tile))
    out2d = pl.pallas_call(
        _silu_kernel,
        out_shape=jax.ShapeDtypeStruct((rows, cols), x_nchw.dtype),
        grid=grid,
        in_specs=[pl.BlockSpec((tr, col_tile), lambda i, j: (i, j))],
        out_specs=pl.BlockSpec((tr, col_tile), lambda i, j: (i, j)),
        compiler_params=pltpu.CompilerParams(
            dimension_semantics=("parallel", "parallel"),
            vmem_limit_bytes=32 * 1024 * 1024,
        ),
    )(x2d)
    return out2d.reshape(n, c, h, w)


# ---------------------------------------------------------------------------
if __name__ == "__main__":
    key = jax.random.PRNGKey(0)
    keys = jax.random.split(key, 10)

    # --- parametric path, standard shapes -----------------------------------
    N, C_IN, C_OUT, H, W = 2, 4, 8, 16, 16
    x = jax.random.normal(keys[0], (N, C_IN, H, W), dtype=jnp.float32)
    w_in = jax.random.normal(keys[1], (C_OUT, C_IN, 1, 1), dtype=jnp.float32) * 0.1
    b_in = jax.random.normal(keys[2], (C_OUT,), dtype=jnp.float32) * 0.1
    w_ex = jax.random.normal(keys[3], (C_OUT, C_IN, 1, 1), dtype=jnp.float32) * 0.1
    b_ex = jax.random.normal(keys[4], (C_OUT,), dtype=jnp.float32) * 0.1

    out_p = jax.block_until_ready(glu_parametric(x, w_in, b_in, w_ex, b_ex))
    a_ref = jnp.einsum("nchw,oc->nohw", x, w_in.reshape(C_OUT, C_IN)) + b_in[None, :, None, None]
    g_ref = jnp.einsum("nchw,oc->nohw", x, w_ex.reshape(C_OUT, C_IN)) + b_ex[None, :, None, None]
    ref_p = a_ref * jax.nn.sigmoid(g_ref)
    assert out_p.shape == (N, C_OUT, H, W)
    assert jnp.allclose(out_p, ref_p, atol=1e-5, rtol=1e-5)

    # --- parametric path, odd channel counts (exercises padding) ------------
    x2 = jax.random.normal(keys[5], (1, 3, 8, 8), dtype=jnp.float32)
    w_in2 = jax.random.normal(keys[6], (5, 3, 1, 1), dtype=jnp.float32) * 0.2
    b_in2 = jax.random.normal(keys[7], (5,), dtype=jnp.float32) * 0.2
    w_ex2 = jax.random.normal(keys[8], (5, 3, 1, 1), dtype=jnp.float32) * 0.2
    b_ex2 = jax.random.normal(keys[9], (5,), dtype=jnp.float32) * 0.2
    out_p2 = jax.block_until_ready(glu_parametric(x2, w_in2, b_in2, w_ex2, b_ex2))
    a2 = jnp.einsum("nchw,oc->nohw", x2, w_in2.reshape(5, 3)) + b_in2[None, :, None, None]
    g2 = jnp.einsum("nchw,oc->nohw", x2, w_ex2.reshape(5, 3)) + b_ex2[None, :, None, None]
    assert out_p2.shape == (1, 5, 8, 8)
    assert jnp.allclose(out_p2, a2 * jax.nn.sigmoid(g2), atol=1e-5, rtol=1e-5)

    # --- non-parametric path -------------------------------------------------
    out_np = jax.block_until_ready(glu_nonparametric(x))
    ref_np = x * jax.nn.sigmoid(x)
    assert out_np.shape == x.shape
    assert jnp.allclose(out_np, ref_np, atol=1e-5, rtol=1e-5)

    print("KERNEL_OK")
</pallas_src>

<mosaic_0001>
module attributes {stable_mosaic.version = 11 : i64} {
  func.func @_glu_parametric_kernel(%arg0: i32, %arg1: i32, %arg2: memref<1x4x256xf32, #tpu.memory_space<vmem>>, %arg3: memref<16x4xf32, #tpu.memory_space<vmem>>, %arg4: memref<16x1xf32, #tpu.memory_space<vmem>>, %arg5: memref<1x8x256xf32, #tpu.memory_space<vmem>>) attributes {dimension_semantics = [#tpu.dimension_semantics<parallel>, #tpu.dimension_semantics<parallel>], iteration_bounds = array<i64: 2, 1>, scalar_prefetch = 0 : i64, scratch_operands = 0 : i64, tpu.core_type = #tpu.core_type<tc>, window_params = [{transform_indices = @transform_0, window_bounds = array<i64: 1, 4, 256>}, {pipeline_mode = #tpu.pipeline_mode<synchronous>, transform_indices = @transform_1, window_bounds = array<i64: 16, 4>}, {pipeline_mode = #tpu.pipeline_mode<synchronous>, transform_indices = @transform_2, window_bounds = array<i64: 16, 1>}, {transform_indices = @transform_3, window_bounds = array<i64: 1, 8, 256>}]} {
    %c0 = arith.constant 0 : index
    %c0_0 = arith.constant 0 : index
    %0 = vector.load %arg3[%c0, %c0_0] : memref<16x4xf32, #tpu.memory_space<vmem>>, vector<16x4xf32>
    %c0_1 = arith.constant 0 : index
    %c0_2 = arith.constant 0 : index
    %c0_3 = arith.constant 0 : index
    %1 = vector.load %arg2[%c0_1, %c0_2, %c0_3] : memref<1x4x256xf32, #tpu.memory_space<vmem>>, vector<1x4x256xf32>
    %2 = vector.shape_cast %1 : vector<1x4x256xf32> to vector<4x256xf32>
    %cst = arith.constant dense<0.000000e+00> : vector<16x256xf32>
    %3 = tpu.matmul %0, %2, %cst {dimension_numbers = #tpu.dot_dimension_numbers<[1], [0], [0], [1], [0, 0, 1, 1], [], []>} : vector<16x4xf32>, vector<4x256xf32>, vector<16x256xf32> -> vector<16x256xf32>
    %c0_4 = arith.constant 0 : index
    %c0_5 = arith.constant 0 : index
    %4 = vector.load %arg4[%c0_4, %c0_5] : memref<16x1xf32, #tpu.memory_space<vmem>>, vector<16x1xf32>
    %5 = vector.broadcast %4 : vector<16x1xf32> to vector<16x256xf32>
    %6 = arith.addf %3, %5 : vector<16x256xf32>
    %7 = vector.extract_strided_slice %6 {offsets = [0, 0], sizes = [8, 256], strides = [1, 1]} : vector<16x256xf32> to vector<8x256xf32>
    %8 = vector.extract_strided_slice %6 {offsets = [8, 0], sizes = [8, 256], strides = [1, 1]} : vector<16x256xf32> to vector<8x256xf32>
    %9 = arith.negf %8 : vector<8x256xf32>
    %10 = math.exp %9 : vector<8x256xf32>
    %cst_6 = arith.constant 1.000000e+00 : f32
    %11 = vector.broadcast %cst_6 : f32 to vector<8x256xf32>
    %12 = arith.addf %11, %10 : vector<8x256xf32>
    %13 = arith.divf %11, %12 : vector<8x256xf32>
    %14 = arith.mulf %7, %13 : vector<8x256xf32>
    %c0_7 = arith.constant 0 : index
    %c0_8 = arith.constant 0 : index
    %c0_9 = arith.constant 0 : index
    %15 = vector.load %arg5[%c0_7, %c0_8, %c0_9] : memref<1x8x256xf32, #tpu.memory_space<vmem>>, vector<1x8x256xf32>
    %16 = vector.shape_cast %15 : vector<1x8x256xf32> to vector<8x256xf32>
    %17 = vector.shape_cast %14 : vector<8x256xf32> to vector<1x8x256xf32>
    tpu.vector_store %arg5[%c0_7, %c0_8, %c0_9], %17 {strides = array<i32>} : memref<1x8x256xf32, #tpu.memory_space<vmem>>, vector<1x8x256xf32>,
    return
  }
  func.func @transform_0(%arg0: i32, %arg1: i32) -> (i32, i32, i32) {
    %c0_i32 = arith.constant 0 : i32
    %c0_i32_0 = arith.constant 0 : i32
    return %arg0, %c0_i32, %arg1 : i32, i32, i32
  }
  func.func @transform_1(%arg0: i32, %arg1: i32) -> (i32, i32) {
    %c0_i32 = arith.constant 0 : i32
    %c0_i32_0 = arith.constant 0 : i32
    %c0_i32_1 = arith.constant 0 : i32
    return %c0_i32, %c0_i32_0 : i32, i32
  }
  func.func @transform_2(%arg0: i32, %arg1: i32) -> (i32, i32) {
    %c0_i32 = arith.constant 0 : i32
    %c0_i32_0 = arith.constant 0 : i32
    %c0_i32_1 = arith.constant 0 : i32
    return %c0_i32, %c0_i32_0 : i32, i32
  }
  func.func @transform_3(%arg0: i32, %arg1: i32) -> (i32, i32, i32) {
    %c0_i32 = arith.constant 0 : i32
    %c0_i32_0 = arith.constant 0 : i32
    return %arg0, %c0_i32, %arg1 : i32, i32, i32
  }
}

</mosaic_0001>

<bundles_post_ra>
// kernel: tpu_custom_call.1
= control target key start
LH: loop header
LB: loop body
LE: loop exit
PB: predicated region body
PF: predicated region fallthrough
CT: control target
= control target key end

     0   :  { %8 = vsyncpa [#allocation3], 0  ;;  %s732_s0 = inlined_call_operand.vmem [shape: f32[2,4,256], index: 0, kind: input, shape index: {}]   ;;  %s733_s1 = inlined_call_operand.vmem [shape: f32[16,4], index: 1, kind: input, shape index: {}]   ;;  %s734_s2 = inlined_call_operand.vmem [shape: f32[16,1], index: 2, kind: input, shape index: {}]   ;;  %s735_s3 = inlined_call_operand.hbm [shape: f32[2,8,256], index: 3, kind: output, shape index: {}]  }
   0x1   :  { %10 = vsyncpa [#allocation3 + $0x1], 0  ;;  %s608_s12 = smov 0   ;;  %s610_s13 = smov 0  }
   0x2   :  { %s612_s14 = smov 0   ;;  %s614_s15 = smov 0  }
   0x3   :  { %s616_s16 = smov 0   ;;  %s618_s17 = smov 0  }
   0x4 LB: > { %s415_s18 = sadd.s32 4294967295, %s583_s17   ;;  %s416_s19 = sadd.s32 4294967294, %s583_s17   ;;  %s583_s17 = sphi %s618_s17, %s16_s17   ;;  %s579_s16 = sphi %s616_s16, %s742_s16   ;;  %s575_s15 = sphi %s614_s15, %s741_s15   ;;  %s571_s14 = sphi %s612_s14, %s740_s14   ;;  %s567_s13 = sphi %s610_s13, %s739_s13   ;;  %s563_s12 = sphi %s608_s12, %s738_s12  }
   0x5   : > { %s28_s20 = sadd.s32 1, %s579_s16  ;;  %s107_s21 = sadd.s32 1, %s571_s14 }
   0x6   : > { %p30_p0 = scmp.ge.s32.totalorder %s28_s20, 2  ;;  %p117_p1 = scmp.ne.s32.totalorder %s571_s14, %s567_s13 }
   0x7   : > { %p118_p2 = scmp.eq.s32.totalorder %s415_s18, 1  ;;  %p123_p3 = scmp.ne.s32.totalorder %s567_s13, %s563_s12 }
   0x8   : > { %s744_s20 = smov (%p30_p0, %s28_s20), 0  ;;  %p124_p5 = scmp.eq.s32.totalorder %s416_s19, 1 }
   0x9   : > { %p648_p4 = por %p118_p2, %p117_p1  ;;  %s102_s23 = ssub.s32 %s579_s16, %s744_s20 }
   0xa   : > { %p419_p6 = scmp.ge.s32.totalorder %s583_s17, 1  ;;  %p105_p7 = scmp.eq.s32.totalorder %s102_s23, 0 }
   0xb   : > { %p655_p8 = por %p124_p5, %p123_p3  ;;  %p161_p9 = scmp.lt.s32.totalorder %s583_s17, 3 }
   0xc   : > { %s661_s25 = scalar_select %p105_p7, %s571_s14, %s107_s21  }
   0xd   : > { %p162_p10 = pnand %p419_p6, %p161_p9 }
   0xe   : > { %p190_p11 = scmp.lt.s32.totalorder (!%p162_p10), %s575_s15, 1  ;;  %v585_v0 = vmov (!%p162_p10), 0.0   ;;  %v204_v1 = vld [vmem:[%s734_s2 + $0x8] sm:$0xff] (!%p162_p10)  ;;  %v586_v2 = vmov (!%p162_p10), 0   ;;  %v203_v3 = vld [vmem:[%s734_s2] sm:$0xff] (!%p162_p10)  ;;  %vm224_vm0 = vcmask (!%p162_p10), 1043456  }
   0xf   : > { %165 = sbr.rel (%p162_p10) target bundleno = 288 (0x120), region = 32  ;;  %293 = vmatprep.mubr.f32.mxu0 (!%p162_p10), %v585_v0  ;;  %299 = vmatprep.mubr.f32.mxu1 (!%p162_p10), %v585_v0  ;;  %v200_v6 = vld [vmem:[%s733_s1] sm:$0xff] (!%p162_p10)  ;;  %vm217_vm1 = vcmask (!%p162_p10), 31744   ;;  %v201_v7 = vld [vmem:[%s733_s1 + $0x8] sm:$0xff] (!%p162_p10)  ;;  %s186_s18 = sand.u32 (!%p162_p10), 1, %s567_s13  }
  0x10   : > { %495 = vset.pattern.permute.xlu0 (!%p162_p10), %v586_v2  ;;  %s420_s19 = sshll.u32 (!%p162_p10), %s186_s18, 4  ;;  %s435_s21 = sshll.u32 (!%p162_p10), %s575_s15, 8 }
  0x11   : > { %212 = vperm.xlu0 (!%p162_p10), %495, %v204_v1   ;;  %s188_s23 = scalar_lea.vmem (!%p162_p10), [#allocation2], %s420_s19  ;;  %s587_s4 = smov (!%p162_p10), [#allocation2]  }
  0x12   : > { %s339_s26 = sshll.u32 (!%p162_p10), %s188_s23, 4  ;;  %s509_s5 = sshll.u32 (!%p162_p10), %s587_s4, 4  ;;  %s687_s26 = int_to_ptr.vmem [resolvable:$true] %s339_s26  ;;  %s510_s5 = int_to_ptr.vmem [resolvable:$false] %s509_s5 }
  0x13   : > { %s505_s30 = scalar_lea.vmem (!%p162_p10), %s687_s26, 256  ;;  %s511_s6 = scalar_lea.vmem (!%p162_p10), %s510_s5, 512 }
  0x14   : > { %p506_p12 = scmp.ne.s32.totalorder (!%p162_p10), %s687_s26, %s505_s30  ;;  %p512_p1 = scmp.lt.s32.totalorder (!%p162_p10), %s687_s26, %s510_s5 }
  0x15   : > { %207 = vperm.xlu0 (!%p162_p10), %495, %v203_v3   ;;  %p513_p2 = scmp.lt.s32.totalorder (!%p162_p10), %s511_s6, %s505_s30 }
  0x16   : > { %s191_s28 = scalar_select %p190_p11, %s575_s15, 1 }
  0x17   : > { %s323_s15 = scalar_lea.sflag [#allocation3], %s186_s18  ;;  %p507_p13 = pnand %p506_p12, %p648_p4 }
  0x18   : > { %s434_s29 = sshll.u32 %s191_s28, 3  ;;  %p514_p3 = por %p513_p2, %p512_p1 }
  0x19   : > { %s197_s7 = scalar_lea.vmem %s732_s0, %s434_s29  ;;  %s685_s29 = scalar_lea.hbm %s735_s3, %s435_s21 }
  0x1a   : > { %v202_v4 = vld [vmem:[%s197_s7] sm:$0xff]  ;;  %p508_p0 = pneg %p507_p13 }
  0x1b   : > { %v216_v5 = vcombine.high %v202_v4, %v202_v4 }
  0x1c   : > { %p515_p5 = pnand %p514_p3, %p508_p0 }
  0x1d   : > { %423 = vmatprep.subr.msk.mxu0 %vm224_vm0, %v216_v5  ;;  %436 = vmatprep.subr.msk.mxu1 %vm224_vm0, %v216_v5 }
  0x1e   : > { %424 = vmatpush1.msk.msra.mxu0 %vm224_vm0, %v202_v4  ;;  %437 = vmatpush1.msk.msra.mxu1 %vm224_vm0, %v202_v4 }
  0x1f   : > { %425 = vmatmul.mubr.msk.f32.vlgmr.msra.gmra.mrb[0].mxu0 %vm217_vm1, %v200_v6  ;;  %426 = vmatmul.mubr.msk.f32.vlgmr.msra.gmra.mrb[0].mxu1 %vm217_vm1, %v201_v7 }
  0x90   : > { %v213_v8 = vpop.permute.xlu0 %212 }
  0x94   : > { %v208_v21 = vpop.permute.xlu0 %207 }
  0xf2   : > { %v295_v9 = vpop.f32.mrb[0].mxu0  ;;  %v301_v10 = vpop.f32.mrb[0].mxu1 }
  0xf3   : > { %v302_v11 = vadd.f32 %v301_v10, %v213_v8  ;;  %v297_v12 = vpop.f32.mrb[1].mxu0  ;;  %v303_v13 = vpop.f32.mrb[1].mxu1  ;;  %v296_v22 = vadd.f32 %v295_v9, %v208_v21 }
  0xf4   : > { %v304_v14 = vadd.f32 %v303_v13, %v213_v8  ;;  %v298_v24 = vadd.f32 %v297_v12, %v208_v21 }
  0xf5   : > { %v427_v15 = vmul.f32 -1.442695, %v302_v11 }
  0xf6   : > { %v428_v16 = vmul.f32 -1.442695, %v304_v14 }
  0xf7   : > { %497 = vpow2.f32 %v427_v15 }
  0xf8   : > { %499 = vpow2.f32 %v428_v16 }
 0x101   : > { %v498_v17 = vpop.eup %497 }
 0x102   : > { %v500_v18 = vpop.eup %499  ;;  %v312_v19 = vadd.f32 1.0, %v498_v17 }
 0x103   : > { %v313_v20 = vadd.f32 1.0, %v500_v18 }
 0x104   : > { %501 = vrcp.f32 %v312_v19 }
 0x105   : > { %503 = vrcp.f32 %v313_v20 }
 0x10e   : > { %v502_v23 = vpop.eup %501 }
 0x10f   : > { %v504_v25 = vpop.eup %503  ;;  %v318_v26 = vmul.f32 %v502_v23, %v296_v22 }
 0x110   : > { %v319_v27 = vmul.f32 %v504_v25, %v298_v24 }
 0x111   : > { %320 = vst [vmem:[%s188_s23] sm:$0xff] %v318_v26 }
 0x112   : > { %321 = vst [vmem:[%s188_s23 + $0x8] sm:$0xff] %v319_v27 }
 0x113   : > { %518 = shalt.err (!%p515_p5)
}
 0x114   : > { %s519_s7 = scalar_lea.hbm %s685_s29, 256  ;;  %s523_s10 = scalar_lea.hbm %s735_s3, 512 }
 0x115   : > { %p520_p6 = scmp.ne.s32.totalorder %s685_s29, %s519_s7  ;;  %p524_p10 = scmp.lt.u32.totalorder %s685_s29, %s735_s3 }
 0x116   : > { %p525_p11 = scmp.lt.u32.totalorder %s523_s10, %s519_s7  ;;  %p527_p13 = scmp.lt.u32.totalorder %s519_s7, %s685_s29 }
 0x117   : > { %p521_p7 = pnand %p520_p6, %p648_p4 }
 0x118   : > { %p526_p12 = por %p525_p11, %p524_p10 }
 0x119   : > { %p522_p9 = pneg %p521_p7 }
 0x11a   : > { %p528_p0 = por %p527_p13, %p526_p12 }
 0x11c   : > { %p529_p1 = pnand %p528_p0, %p522_p9 }
 0x11e   : > { %532 = shalt.err (!%p529_p1)
}
 0x11f   : > { %438 = dma.vmem_to_hbm [thread:$0]  (%p648_p4), %s687_s26, 256, %s685_s29, %s323_s15  }
 0x120 PF: > { %p444_p2 = scmp.ge.s32.totalorder %s583_s17, 2  ;;  %s351_s19 = sand.u32 1, %s563_s12  }
 0x121   : > { %s352_s21 = scalar_lea.sflag [#allocation3], %s351_s19 }
 0x122   : > { %p441_p3 = pnand %p444_p2, %p655_p8 }
 0x124   : > { %558 = dma.done.wait (!%p441_p3), %s352_s21, 256  }
 0x125   : > { %560 = vsyncadd (!%p441_p3), %s352_s21, 4294967040  ;;  %s16_s17 = sadd.s32 1, %s583_s17   ;;  %s738_s12 = smov %s567_s13 }
 0x126   : > { %p13_p5 = scmp.ge.s32.totalorder %s16_s17, 4   ;;  %s739_s13 = smov %s571_s14 }
 0x127   : > { %s740_s14 = smov %s661_s25  ;;  %s741_s15 = smov %s579_s16 }
 0x128   : > { %s742_s16 = smov %s744_s20  ;;  %15 = sbr.rel (!%p13_p5) target bundleno = 4 (0x4), region = 67 }
 0x12f   :  { %357 = vsyncpa [#allocation3], 1 }
 0x130   :  { %359 = vsyncpa [#allocation3 + $0x1], 1 }

</bundles_post_ra>
